<compile_context>
chip_gen: v7x
topology: tpu7x:2x2x1
jax: 0.10.0
libtpu: 0.0.40
codegen_flags: <defaults>
</compile_context>

<pallas_src>
import jax
import jax.numpy as jnp
from jax.experimental import pallas as pl
from jax.experimental.pallas import tpu as pltpu

HIDDEN = 256


def _round_up(n, m):
    return ((n + m - 1) // m) * m


def _cdiv(a, b):
    return (a + b - 1) // b


def _choose_batch_tile(batch):
    """Pick (tile_rows, padded_batch).

    Tiny batches: one grid step, pad only to the 8-row sublane multiple.
    Larger batches: >= 2 grid steps (megacore sharding / DMA-compute overlap),
    tiles sized from B so the last tile wastes at most a few rows.
    """
    b8 = _round_up(batch, 8)
    if b8 <= 256:
        return b8, b8
    n_steps = max(2, _cdiv(b8, 512))          # ~512-row tiles, at least 2 steps
    tb = _round_up(_cdiv(b8, n_steps), 8)
    return tb, tb * n_steps


def mlp_kernel(x_ref, w1_ref, b1_ref, w2_ref, b2_ref, o_ref):
    # Cast the activation tile to bf16 in-kernel (cheap VPU op, hidden under DMA).
    x = x_ref[...].astype(jnp.bfloat16)
    # Hidden layer: bf16 x @ bf16 w1 -> f32 accumulate, + b1 (f32), ReLU.
    h = jnp.dot(x, w1_ref[...], preferred_element_type=jnp.float32)
    # Materialize the intermediate as bf16 (halves its VMEM traffic).
    h = jnp.maximum(h + b1_ref[...], 0.0).astype(jnp.bfloat16)
    # Output layer: bf16 h @ bf16 w2 -> f32 accumulate, + b2 (f32), ReLU.
    y = jnp.dot(h, w2_ref[...], preferred_element_type=jnp.float32)
    o_ref[...] = jnp.maximum(y + b2_ref[...], 0.0).astype(o_ref.dtype)


def prepare_params(w1, b1, w2, b2):
    """One-time param prep (hoisted out of the per-step forward):
    weights -> bf16 MXU operands, biases -> f32 row vectors."""
    w1_p = jnp.asarray(w1, jnp.bfloat16)
    w2_p = jnp.asarray(w2, jnp.bfloat16)
    b1_p = jnp.asarray(b1, jnp.float32).reshape(1, w1.shape[1])
    b2_p = jnp.asarray(b2, jnp.float32).reshape(1, w2.shape[1])
    return w1_p, b1_p, w2_p, b2_p


def mlp_net(x, w1, b1, w2, b2):
    """MLP forward with a batch-tiled Pallas kernel.

    x:  [B, obs_dim]         (f32)
    w1: [obs_dim, hidden]    (bf16 from prepare_params; any float accepted)
    b1: [1, hidden]          (f32)
    w2: [hidden, n_actions]  (bf16)
    b2: [1, n_actions]       (f32)
    Returns [B, n_actions] f32.
    """
    B, obs_dim = x.shape
    hidden, n_actions = w2.shape

    # No-ops if prepare_params() was already used; kept for robustness.
    w1 = w1.astype(jnp.bfloat16)
    w2 = w2.astype(jnp.bfloat16)
    b1 = b1.reshape(1, hidden).astype(jnp.float32)
    b2 = b2.reshape(1, n_actions).astype(jnp.float32)

    tb, b_p = _choose_batch_tile(B)
    x_p = jnp.pad(x, ((0, b_p - B), (0, 0))) if b_p != B else x

    flops = 2 * b_p * (obs_dim * hidden + hidden * n_actions)
    bytes_accessed = (
        b_p * obs_dim * 4            # x in (f32)
        + obs_dim * hidden * 2       # w1 (bf16)
        + hidden * 4                 # b1
        + hidden * n_actions * 2     # w2 (bf16)
        + n_actions * 4              # b2
        + b_p * n_actions * 4        # out (f32)
    )

    grid = (b_p // tb,)
    out = pl.pallas_call(
        mlp_kernel,
        out_shape=jax.ShapeDtypeStruct((b_p, n_actions), jnp.float32),
        grid=grid,
        in_specs=[
            # Batch tile of activations: streams through the grid.
            # Last dim == full obs_dim -> exempt from the 128-lane rule.
            pl.BlockSpec((tb, obs_dim), lambda i: (i, 0)),
            # Weights / biases: same block every step -> VMEM-resident.
            pl.BlockSpec((obs_dim, hidden), lambda i: (0, 0)),
            pl.BlockSpec((1, hidden), lambda i: (0, 0)),
            pl.BlockSpec((hidden, n_actions), lambda i: (0, 0)),
            pl.BlockSpec((1, n_actions), lambda i: (0, 0)),
        ],
        # Output at true n_actions width: ~16x fewer writeback bytes than a
        # 128-lane f32 pad, at the cost of a masked store (acceptable here).
        out_specs=pl.BlockSpec((tb, n_actions), lambda i: (i, 0)),
        compiler_params=pltpu.CompilerParams(
            dimension_semantics=("parallel",),
        ),
        cost_estimate=pl.CostEstimate(
            flops=flops, transcendentals=0, bytes_accessed=bytes_accessed),
    )(x_p, w1, b1, w2, b2)

    return out[:B] if b_p != B else out


def init_params(key, obs_dim, n_actions, hidden=HIDDEN):
    """Mirror torch nn.Linear's U(-1/sqrt(fan_in), +1/sqrt(fan_in)) init."""
    k1, k2, k3, k4 = jax.random.split(key, 4)
    bound1 = 1.0 / jnp.sqrt(obs_dim)
    bound2 = 1.0 / jnp.sqrt(hidden)
    w1 = jax.random.uniform(k1, (obs_dim, hidden), jnp.float32, -bound1, bound1)
    b1 = jax.random.uniform(k2, (1, hidden), jnp.float32, -bound1, bound1)
    w2 = jax.random.uniform(k3, (hidden, n_actions), jnp.float32, -bound2, bound2)
    b2 = jax.random.uniform(k4, (1, n_actions), jnp.float32, -bound2, bound2)
    return w1, b1, w2, b2


def _ref_bf16(x, w1, b1, w2, b2):
    """Pure-JAX reference with the same bf16-operand / f32-accumulate recipe."""
    h = jnp.dot(x.astype(jnp.bfloat16), w1.astype(jnp.bfloat16),
                preferred_element_type=jnp.float32)
    h = jnp.maximum(h + b1, 0.0).astype(jnp.bfloat16)
    y = jnp.dot(h, w2.astype(jnp.bfloat16),
                preferred_element_type=jnp.float32)
    return jnp.maximum(y + b2, 0.0)


if __name__ == "__main__":
    key = jax.random.PRNGKey(0)
    kx, kp, kx2 = jax.random.split(key, 3)

    B, obs_dim, n_actions = 8, 16, 8
    x = jax.random.normal(kx, (B, obs_dim), jnp.float32)
    w1, b1, w2, b2 = init_params(kp, obs_dim, n_actions)
    # One-time param prep (hoisted out of the per-call forward).
    w1_p, b1_p, w2_p, b2_p = prepare_params(w1, b1, w2, b2)

    # Small-batch case (single grid step).
    out = mlp_net(x, w1_p, b1_p, w2_p, b2_p)
    jax.block_until_ready(out)
    assert out.shape == (B, n_actions)
    ref = _ref_bf16(x, w1, b1, w2, b2)
    assert jnp.allclose(out, ref, atol=1e-3, rtol=1e-3)
    # Loose check vs full-f32 math (bf16 operand rounding only).
    ref_f32 = jnp.maximum(jnp.maximum(x @ w1 + b1, 0.0) @ w2 + b2, 0.0)
    assert jnp.allclose(out, ref_f32, atol=5e-2, rtol=5e-2)

    # Larger batch that is not a tile multiple: exercises padding + grid > 1.
    B2 = 300
    x2 = jax.random.normal(kx2, (B2, obs_dim), jnp.float32)
    out2 = mlp_net(x2, w1_p, b1_p, w2_p, b2_p)
    jax.block_until_ready(out2)
    assert out2.shape == (B2, n_actions)
    ref2 = _ref_bf16(x2, w1, b1, w2, b2)
    assert jnp.allclose(out2, ref2, atol=1e-3, rtol=1e-3)

    print("KERNEL_OK")
</pallas_src>

<mosaic_0001>
module attributes {stable_mosaic.version = 11 : i64} {
  func.func @mlp_kernel(%arg0: i32, %arg1: memref<8x16xf32, #tpu.memory_space<vmem>>, %arg2: memref<16x256xbf16, #tpu.memory_space<vmem>>, %arg3: memref<1x256xf32, #tpu.memory_space<vmem>>, %arg4: memref<256x8xbf16, #tpu.memory_space<vmem>>, %arg5: memref<1x8xf32, #tpu.memory_space<vmem>>, %arg6: memref<8x8xf32, #tpu.memory_space<vmem>>) attributes {dimension_semantics = [#tpu.dimension_semantics<parallel>], iteration_bounds = array<i64: 1>, scalar_prefetch = 0 : i64, scratch_operands = 0 : i64, tpu.core_type = #tpu.core_type<tc>, window_params = [{transform_indices = @transform_0, window_bounds = array<i64: 8, 16>}, {pipeline_mode = #tpu.pipeline_mode<synchronous>, transform_indices = @transform_1, window_bounds = array<i64: 16, 256>}, {pipeline_mode = #tpu.pipeline_mode<synchronous>, transform_indices = @transform_2, window_bounds = array<i64: 1, 256>}, {pipeline_mode = #tpu.pipeline_mode<synchronous>, transform_indices = @transform_3, window_bounds = array<i64: 256, 8>}, {pipeline_mode = #tpu.pipeline_mode<synchronous>, transform_indices = @transform_4, window_bounds = array<i64: 1, 8>}, {transform_indices = @transform_5, window_bounds = array<i64: 8, 8>}]} {
    %c0 = arith.constant 0 : index
    %c0_0 = arith.constant 0 : index
    %0 = vector.load %arg1[%c0, %c0_0] : memref<8x16xf32, #tpu.memory_space<vmem>>, vector<8x16xf32>
    %1 = arith.truncf %0 : vector<8x16xf32> to vector<8x16xbf16>
    %c0_1 = arith.constant 0 : index
    %c0_2 = arith.constant 0 : index
    %2 = vector.load %arg2[%c0_1, %c0_2] : memref<16x256xbf16, #tpu.memory_space<vmem>>, vector<16x256xbf16>
    %cst = arith.constant dense<0.000000e+00> : vector<8x256xf32>
    %3 = tpu.matmul %1, %2, %cst {dimension_numbers = #tpu.dot_dimension_numbers<[1], [0], [0], [1], [0, 0, 1, 1], [], []>} : vector<8x16xbf16>, vector<16x256xbf16>, vector<8x256xf32> -> vector<8x256xf32>
    %c0_3 = arith.constant 0 : index
    %c0_4 = arith.constant 0 : index
    %4 = vector.load %arg3[%c0_3, %c0_4] : memref<1x256xf32, #tpu.memory_space<vmem>>, vector<1x256xf32>
    %5 = vector.broadcast %4 : vector<1x256xf32> to vector<8x256xf32>
    %6 = arith.addf %3, %5 : vector<8x256xf32>
    %cst_5 = arith.constant 0.000000e+00 : f32
    %7 = vector.broadcast %cst_5 : f32 to vector<8x256xf32>
    %8 = arith.maximumf %6, %7 : vector<8x256xf32>
    %9 = arith.truncf %8 : vector<8x256xf32> to vector<8x256xbf16>
    %c0_6 = arith.constant 0 : index
    %c0_7 = arith.constant 0 : index
    %10 = vector.load %arg4[%c0_6, %c0_7] : memref<256x8xbf16, #tpu.memory_space<vmem>>, vector<256x8xbf16>
    %cst_8 = arith.constant dense<0.000000e+00> : vector<8x8xf32>
    %11 = tpu.matmul %9, %10, %cst_8 {dimension_numbers = #tpu.dot_dimension_numbers<[1], [0], [0], [1], [0, 0, 1, 1], [], []>} : vector<8x256xbf16>, vector<256x8xbf16>, vector<8x8xf32> -> vector<8x8xf32>
    %c0_9 = arith.constant 0 : index
    %c0_10 = arith.constant 0 : index
    %12 = vector.load %arg5[%c0_9, %c0_10] : memref<1x8xf32, #tpu.memory_space<vmem>>, vector<1x8xf32>
    %13 = vector.broadcast %12 : vector<1x8xf32> to vector<8x8xf32>
    %14 = arith.addf %11, %13 : vector<8x8xf32>
    %cst_11 = arith.constant 0.000000e+00 : f32
    %15 = vector.broadcast %cst_11 : f32 to vector<8x8xf32>
    %16 = arith.maximumf %14, %15 : vector<8x8xf32>
    %c0_12 = arith.constant 0 : index
    %c0_13 = arith.constant 0 : index
    %17 = vector.load %arg6[%c0_12, %c0_13] : memref<8x8xf32, #tpu.memory_space<vmem>>, vector<8x8xf32>
    tpu.vector_store %arg6[%c0_12, %c0_13], %16 {strides = array<i32>} : memref<8x8xf32, #tpu.memory_space<vmem>>, vector<8x8xf32>,
    return
  }
  func.func @transform_0(%arg0: i32) -> (i32, i32) {
    %c0_i32 = arith.constant 0 : i32
    %c0_i32_0 = arith.constant 0 : i32
    return %arg0, %c0_i32 : i32, i32
  }
  func.func @transform_1(%arg0: i32) -> (i32, i32) {
    %c0_i32 = arith.constant 0 : i32
    %c0_i32_0 = arith.constant 0 : i32
    %c0_i32_1 = arith.constant 0 : i32
    return %c0_i32, %c0_i32_0 : i32, i32
  }
  func.func @transform_2(%arg0: i32) -> (i32, i32) {
    %c0_i32 = arith.constant 0 : i32
    %c0_i32_0 = arith.constant 0 : i32
    %c0_i32_1 = arith.constant 0 : i32
    return %c0_i32, %c0_i32_0 : i32, i32
  }
  func.func @transform_3(%arg0: i32) -> (i32, i32) {
    %c0_i32 = arith.constant 0 : i32
    %c0_i32_0 = arith.constant 0 : i32
    %c0_i32_1 = arith.constant 0 : i32
    return %c0_i32, %c0_i32_0 : i32, i32
  }
  func.func @transform_4(%arg0: i32) -> (i32, i32) {
    %c0_i32 = arith.constant 0 : i32
    %c0_i32_0 = arith.constant 0 : i32
    %c0_i32_1 = arith.constant 0 : i32
    return %c0_i32, %c0_i32_0 : i32, i32
  }
  func.func @transform_5(%arg0: i32) -> (i32, i32) {
    %c0_i32 = arith.constant 0 : i32
    %c0_i32_0 = arith.constant 0 : i32
    return %arg0, %c0_i32 : i32, i32
  }
}

</mosaic_0001>

<bundles_post_ra>
// kernel: tpu_custom_call.1
= control target key start
LH: loop header
LB: loop body
LE: loop exit
PB: predicated region body
PF: predicated region fallthrough
CT: control target
= control target key end

     0   :  { %v376_v2 = vmov 0   ;;  %vm48_vm0 = vcmask 130048   ;;  %s483_s0 = inlined_call_operand.vmem [shape: f32[8,16], index: 0, kind: input, shape index: {}]   ;;  %s484_s1 = inlined_call_operand.vmem [shape: bf16[16,256], index: 1, kind: input, shape index: {}]   ;;  %s485_s2 = inlined_call_operand.vmem [shape: f32[1,256], index: 2, kind: input, shape index: {}]   ;;  %s486_s3 = inlined_call_operand.vmem [shape: bf16[256,8], index: 3, kind: input, shape index: {}]   ;;  %s487_s4 = inlined_call_operand.vmem [shape: f32[1,8], index: 4, kind: input, shape index: {}]   ;;  %s488_s5 = inlined_call_operand.hbm [shape: f32[8,8], index: 5, kind: output, shape index: {}]  }
   0x1   :  { %v333_v0 = vld [vmem:[%s484_s1 + $0x4] ss:$8 sps:$4 sm:$0xff]   ;;  %v335_v1 = vld [vmem:[%s484_s1] ss:$8 sps:$4 sm:$0xff]   ;;  %84 = vmatprep.mubr.bf16.mxu0 %v376_v2  ;;  %v340_v9 = vld [vmem:[%s486_s3 + $0x50] sm:$0xff]  }
   0x2   :  { %v22_v3 = vld [vmem:[%s483_s0] sm:$0xff]  ;;  %52 = vmatprep.subr.bf16.mxu0 %v333_v0  ;;  %v338_v7 = vld [vmem:[%s486_s3 + $0x48] sm:$0xff]   ;;  %v341_v10 = vld [vmem:[%s486_s3 + $0x10] sm:$0xff]  }
   0x3   :  { %v23_v4 = vpack.c.bf16 %v22_v3, %v22_v3  ;;  %v336_v5 = vld [vmem:[%s486_s3 + $0x40] sm:$0xff]   ;;  %53 = vmatpush1.bf16.msra.mxu0 %v335_v1  ;;  %v339_v8 = vld [vmem:[%s486_s3 + $0x8] sm:$0xff]   ;;  %v342_v11 = vld [vmem:[%s486_s3 + $0x58] sm:$0xff]  }
   0x4   :  { %v337_v6 = vld [vmem:[%s486_s3] sm:$0xff]   ;;  %309 = vmatprep.subr.bf16.mxu1 %v336_v5  ;;  %v343_v12 = vld [vmem:[%s486_s3 + $0x18] sm:$0xff]  }
   0x5   :  { %310 = vmatpush3.bf16.msra.mxu1 %v337_v6  ;;  %v344_v13 = vld [vmem:[%s486_s3 + $0x60] sm:$0xff]  }
   0x6   :  { %291 = vmatmul.mubr.msk.bf16.vlgmr.msra.gmra.mrb[0].mxu0 %vm48_vm0, %v23_v4  ;;  %311 = vmatprep.subr.bf16.mxu1 %v338_v7 }
   0x9   :  { %312 = vmatpush3.bf16.msra.mxu1 %v339_v8 }
   0xa   :  { %313 = vmatprep.subr.bf16.mxu1 %v340_v9 }
   0xd   :  { %314 = vmatpush3.bf16.msra.mxu1 %v341_v10 }
   0xe   :  { %315 = vmatprep.subr.bf16.mxu1 %v342_v11 }
   0xf   :  { %10 = vsyncpa [#allocation3], 0  ;;  %v345_v14 = vld [vmem:[%s486_s3 + $0x20] sm:$0xff]   ;;  %v346_v15 = vld [vmem:[%s486_s3 + $0x68] sm:$0xff]   ;;  %v28_v21 = vlaneseq  ;;  %vm273_vm1 = vcmask 64512  }
  0x10   :  { %v347_v16 = vld [vmem:[%s486_s3 + $0x28] sm:$0xff]   ;;  %v348_v17 = vld [vmem:[%s486_s3 + $0x70] sm:$0xff]   ;;  %v350_v19 = vld [vmem:[%s486_s3 + $0x78] sm:$0xff]  }
  0x11   :  { %316 = vmatpush3.bf16.msra.mxu1 %v343_v12  ;;  %v349_v18 = vld [vmem:[%s486_s3 + $0x30] sm:$0xff]   ;;  %v351_v20 = vld [vmem:[%s486_s3 + $0x38] sm:$0xff]   ;;  %v29_v22 = vshrl.u32 %v28_v21, 7  ;;  %v26_v24 = vld [vmem:[%s485_s2] sm:$0x3]  ;;  %s377_s2 = smov [#allocation2]  }
  0x12   :  { %317 = vmatprep.subr.bf16.mxu1 %v344_v13  ;;  %v292_v39 = vld [vmem:[%s487_s4] ss:$0 sm:$0xff]  ;;  %s281_s30 = sshll.u32 %s377_s2, 4  ;;  %s282_s30 = int_to_ptr.vmem [resolvable:$true] %s281_s30 }
  0x13   :  { %v30_v23 = vsub.s32 0, %v29_v22  ;;  %v34_v25 = vsub.s32 1, %v29_v22  ;;  %s352_s6 = scalar_lea.vmem %s282_s30, 128  ;;  %p357_p1 = scmp.lt.s32.totalorder %s282_s30, %s282_s30 }
  0x14   :  { %p353_p0 = scmp.ne.s32.totalorder %s282_s30, %s352_s6  ;;  %p358_p2 = scmp.lt.s32.totalorder %s352_s6, %s352_s6 }
  0x15   :  { %318 = vmatpush3.bf16.msra.mxu1 %v345_v14  ;;  %v31_v26 = vrot.slane %v26_v24, %v30_v23  ;;  %v35_v27 = vrot.slane %v26_v24, %v34_v25 }
  0x16   :  { %319 = vmatprep.subr.bf16.mxu1 %v346_v15  ;;  %p359_p3 = por %p358_p2, %p357_p1 }
  0x18   :  { %p360_p4 = pnand %p359_p3, %p353_p0 }
  0x19   :  { %320 = vmatpush3.bf16.msra.mxu1 %v347_v16 }
  0x1a   :  { %321 = vmatprep.subr.bf16.mxu1 %v348_v17 }
  0x1d   :  { %322 = vmatpush3.bf16.msra.mxu1 %v349_v18 }
  0x1e   :  { %323 = vmatprep.subr.bf16.mxu1 %v350_v19 }
  0x21   :  { %324 = vmatpush3.bf16.msra.mxu1 %v351_v20 }
  0xd9   :  { %v86_v28 = vpop.f32.mrb[0].mxu0 }
  0xda   :  { %v87_v29 = vadd.f32 %v86_v28, %v31_v26  ;;  %v88_v30 = vpop.f32.mrb[1].mxu0 }
  0xdb   :  { %v89_v31 = vadd.f32 %v88_v30, %v35_v27  ;;  %v90_v32 = vpop.f32.mrb[2].mxu0 }
  0xdc   :  { %v93_v33 = vmax.f32 %v87_v29, 0.0  ;;  %v91_v34 = vpop.f32.mrb[3].mxu0 }
  0xdd   :  { %v94_v35 = vmax.f32 %v89_v31, 0.0 }
  0xde   :  { %v95_v37 = vpack.c.bf16 %v93_v33, %v93_v33 }
  0xdf   :  { %v96_v36 = vpack.c.bf16 %v94_v35, %v94_v35 }
  0xe1   :  { %264 = vmatprep.mubr.bf16.mxu1 %v96_v36 }
  0xe2   :  { %265 = vmatmul.mubr.bf16.vlgmr.msra.gmra.mrb[0].mxu1 %v95_v37 }
 0x1b5   :  { %v325_v38 = vpop.f32.mrb[0].mxu1 }
 0x1b6   :  { %v326_v40 = vpop.f32.mrb[1].mxu1 }
 0x1b7   :  { %v327_v41 = vadd.f32 %v326_v40, %v325_v38  ;;  %v328_v42 = vpop.f32.mrb[2].mxu1 }
 0x1b8   :  { %v329_v43 = vpop.f32.mrb[3].mxu1 }
 0x1b9   :  { %v267_v44 = vadd.f32 %v327_v41, %v292_v39 }
 0x1bb   :  { %v272_v45 = vmax.f32 %v267_v44, 0.0 }
 0x1bd   :  { %274 = vst.msk [vmem:[#allocation2] sm:$0xff] %vm273_vm1, %v272_v45 }
 0x1be   :  { %363 = shalt.err (!%p360_p4)
}
 0x1bf   :  { %s364_s8 = scalar_lea.hbm %s488_s5, 128 }
 0x1c0   :  { %p365_p5 = scmp.ne.s32.totalorder %s488_s5, %s364_s8  ;;  %p368_p6 = scmp.lt.u32.totalorder %s364_s8, %s488_s5 }
 0x1c2   :  { %p370_p7 = pnand %p368_p6, %p365_p5 }
 0x1c4   :  { %373 = shalt.err (!%p370_p7)
}
 0x1c5   :  { %284 = dma.vmem_to_hbm [thread:$0]  %s282_s30, 128, %s488_s5, [#allocation3]  }
 0x1c6   :  { %374 = dma.done.wait [#allocation3], 128  }
 0x1c7   :  { %375 = vsyncadd [#allocation3], 4294967168 }
 0x1c8   :  { %288 = vsyncpa [#allocation3], 1 }

</bundles_post_ra>
